<compile_context>
chip_gen: v5e
topology: v5e:2x2
jax: 0.10.0
libtpu: 0.0.40
codegen_flags: <defaults>
</compile_context>

<pallas_src>
import jax
import jax.numpy as jnp
from jax.experimental import pallas as pl
from jax.experimental.pallas import tpu as pltpu


def _round_up(x, m):
    return (x + m - 1) // m * m


def _mxu_align(x):
    """256-align (v6e/v7x MXU tile) when the extra zero padding is <= x/16,
    else 128-align (lane width).  Padding K/N costs real HBM bytes on the
    dominant (M, K) operand, so only take 256 when it is essentially free."""
    x256 = _round_up(x, 256)
    return x256 if (x256 - x) * 16 <= x else _round_up(x, 128)


def _patch_embed_kernel(x_ref, w_ref, b_ref, o_ref):
    # x_ref: (TM, Kp) compute-dtype flattened-patch tile (pipelined over M)
    # w_ref: (Kp, Np) compute-dtype flattened conv weight (grid-invariant)
    # b_ref: (1,  Np) f32 conv bias                        (grid-invariant)
    # o_ref: (TM, Np) output tile, written directly in the final dtype
    acc = jnp.dot(x_ref[...], w_ref[...], preferred_element_type=jnp.float32)
    o_ref[...] = (acc + b_ref[...]).astype(o_ref.dtype)


def patch_embed(x, weight, bias, pos_embed, cls_token, patch_size,
                *, compute_dtype=jnp.bfloat16, tile_m=2048):
    """x: (B, C, H, W). weight: (embed_dim, C, P, P). bias: (embed_dim,).

    Returns (B, n_patches, embed_dim) in x.dtype, matching PatchEmbed.forward.
    """
    del pos_embed, cls_token  # unused in the reference forward()
    B, C, H, W = x.shape
    P = patch_size
    Hp, Wp = H // P, W // P
    n_patches = Hp * Wp
    embed_dim = weight.shape[0]
    out_dtype = x.dtype  # emit the final dtype straight from the kernel

    # --- glue: patchify (B, C, H, W) -> (B*n_patches, C*P*P) ----------------
    xp = x.reshape(B, C, Hp, P, Wp, P).transpose(0, 2, 4, 1, 3, 5)
    xp = xp.reshape(B * n_patches, C * P * P).astype(compute_dtype)
    # conv weight (E, C, P, P) -> (C*P*P, E)
    w2d = weight.reshape(embed_dim, C * P * P).T.astype(compute_dtype)

    M, K = xp.shape
    N = embed_dim

    # --- lane-dense / MXU-friendly padding ----------------------------------
    Kp = _mxu_align(K)   # zero-pad K: no-op for the dot
    Np = _mxu_align(N)   # lane-dense (unmasked) output stores

    in_item = jnp.dtype(compute_dtype).itemsize
    out_item = jnp.dtype(out_dtype).itemsize

    def vmem_need(tm):
        # 2 pipeline buffers for the x and out tiles, and (conservatively,
        # since we keep the default double-buffering) 2 buffers for the
        # grid-invariant weight / bias blocks.  Bias pads to 8 sublanes.
        return (2 * tm * Kp * in_item + 2 * tm * Np * out_item
                + 2 * Kp * Np * in_item + 2 * 8 * Np * 4)

    # M tile: multiple of 16 (bf16 packs 2 rows/sublane), >= 2 blocks when
    # possible (keeps both v7x TensorCores fed via the "parallel" axis), shrunk
    # until it fits a VMEM budget that is safe across v5e/v6e/v7x.
    VMEM_BUDGET = 24 * 1024 * 1024
    TM = min(tile_m, _round_up(max(pl.cdiv(M, 2), 16), 16))
    while TM > 16 and vmem_need(TM) > VMEM_BUDGET:
        TM = max(16, _round_up(TM // 2, 16))
    grid_m = pl.cdiv(M, TM)
    TM = _round_up(pl.cdiv(M, grid_m), 16)   # equalize tiles -> minimal padding
    Mp = TM * grid_m

    xp = jnp.pad(xp, ((0, Mp - M), (0, Kp - K)))
    w2d = jnp.pad(w2d, ((0, Kp - K), (0, Np - N)))
    b2d = jnp.pad(bias.astype(jnp.float32), (0, Np - N)).reshape(1, Np)

    cost = pl.CostEstimate(
        flops=2 * Mp * Kp * Np,
        transcendentals=0,
        bytes_accessed=(Mp * Kp * in_item + Kp * Np * in_item
                        + Np * 4 + Mp * Np * out_item),
    )

    out = pl.pallas_call(
        _patch_embed_kernel,
        out_shape=jax.ShapeDtypeStruct((Mp, Np), out_dtype),
        grid_spec=pl.GridSpec(
            grid=(grid_m,),
            in_specs=[
                pl.BlockSpec((TM, Kp), lambda i: (i, 0)),   # x tile (pipelined)
                pl.BlockSpec((Kp, Np), lambda i: (0, 0)),   # weight (resident)
                pl.BlockSpec((1, Np), lambda i: (0, 0)),    # bias (resident)
            ],
            out_specs=pl.BlockSpec((TM, Np), lambda i: (i, 0)),
        ),
        compiler_params=pltpu.CompilerParams(
            dimension_semantics=("parallel",),           # shard M across TCs
            vmem_limit_bytes=int(vmem_need(TM) * 1.5) + (4 << 20),
            allow_input_fusion=[True, False, False],     # fuse patchify into x
        ),
        cost_estimate=cost,
    )(xp, w2d, b2d)

    # --- glue: strip padding, (Mp, Np) -> (B, n_patches, E); no dtype cast ---
    return out[:M, :N].reshape(B, n_patches, embed_dim)


if __name__ == "__main__":
    # Small shapes consistent with the module.
    B, C = 2, 4
    img_size, patch_size = 16, 4
    embed_dim = 32
    n_patches = (img_size // patch_size) ** 2

    key = jax.random.PRNGKey(0)
    kx, kw, kb = jax.random.split(key, 3)

    x = jax.random.normal(kx, (B, C, img_size, img_size), dtype=jnp.float32)
    # Deterministic synthetic params (Conv2d(in_chans, embed_dim, k=P, s=P))
    weight = jax.random.normal(
        kw, (embed_dim, C, patch_size, patch_size), dtype=jnp.float32) * 0.02
    bias = jax.random.normal(kb, (embed_dim,), dtype=jnp.float32) * 0.02
    # Unused-in-forward parameters (kept for module-shape fidelity).
    pos_embed = jnp.zeros((1, n_patches, embed_dim), dtype=jnp.float32)
    cls_token = jnp.zeros((1, 1, embed_dim), dtype=jnp.float32)

    fwd = jax.jit(patch_embed, static_argnames=("patch_size",))
    out = fwd(x, weight, bias, pos_embed, cls_token, patch_size=patch_size)
    out = jax.block_until_ready(out)
    assert out.shape == (B, n_patches, embed_dim)
    assert out.dtype == x.dtype

    # Reference check (pure JAX): strided conv == patchify + matmul.
    # The kernel computes in bf16 with f32 accumulation, so compare against the
    # same bf16-rounded operands accumulated in f32.
    P = patch_size
    Hp = Wp = img_size // P
    xr = x.astype(jnp.bfloat16).astype(jnp.float32)
    wr = weight.astype(jnp.bfloat16).astype(jnp.float32)
    xpr = xr.reshape(B, C, Hp, P, Wp, P).transpose(0, 2, 4, 1, 3, 5)
    xpr = xpr.reshape(B, Hp * Wp, C * P * P)
    ref = jnp.einsum("bpk,ek->bpe", xpr, wr.reshape(embed_dim, -1)) + bias
    assert jnp.allclose(out, ref, atol=1e-2, rtol=1e-2)

    print("KERNEL_OK")
</pallas_src>

<mosaic_0001>
module attributes {stable_mosaic.version = 11 : i64} {
  func.func @_patch_embed_kernel(%arg0: i32, %arg1: memref<16x128xbf16, #tpu.memory_space<vmem>>, %arg2: memref<128x128xbf16, #tpu.memory_space<vmem>>, %arg3: memref<1x128xf32, #tpu.memory_space<vmem>>, %arg4: memref<16x128xf32, #tpu.memory_space<vmem>>) attributes {dimension_semantics = [#tpu.dimension_semantics<parallel>], iteration_bounds = array<i64: 2>, scalar_prefetch = 0 : i64, scratch_operands = 0 : i64, tpu.core_type = #tpu.core_type<tc>, window_params = [{transform_indices = @transform_0, window_bounds = array<i64: 16, 128>}, {pipeline_mode = #tpu.pipeline_mode<synchronous>, transform_indices = @transform_1, window_bounds = array<i64: 128, 128>}, {pipeline_mode = #tpu.pipeline_mode<synchronous>, transform_indices = @transform_2, window_bounds = array<i64: 1, 128>}, {transform_indices = @transform_3, window_bounds = array<i64: 16, 128>}]} {
    %c0 = arith.constant 0 : index
    %c0_0 = arith.constant 0 : index
    %0 = vector.load %arg1[%c0, %c0_0] : memref<16x128xbf16, #tpu.memory_space<vmem>>, vector<16x128xbf16>
    %c0_1 = arith.constant 0 : index
    %c0_2 = arith.constant 0 : index
    %1 = vector.load %arg2[%c0_1, %c0_2] : memref<128x128xbf16, #tpu.memory_space<vmem>>, vector<128x128xbf16>
    %cst = arith.constant dense<0.000000e+00> : vector<16x128xf32>
    %2 = tpu.matmul %0, %1, %cst {dimension_numbers = #tpu.dot_dimension_numbers<[1], [0], [0], [1], [0, 0, 1, 1], [], []>} : vector<16x128xbf16>, vector<128x128xbf16>, vector<16x128xf32> -> vector<16x128xf32>
    %c0_3 = arith.constant 0 : index
    %c0_4 = arith.constant 0 : index
    %3 = vector.load %arg3[%c0_3, %c0_4] : memref<1x128xf32, #tpu.memory_space<vmem>>, vector<1x128xf32>
    %4 = vector.broadcast %3 : vector<1x128xf32> to vector<16x128xf32>
    %5 = arith.addf %2, %4 : vector<16x128xf32>
    %c0_5 = arith.constant 0 : index
    %c0_6 = arith.constant 0 : index
    %6 = vector.load %arg4[%c0_5, %c0_6] : memref<16x128xf32, #tpu.memory_space<vmem>>, vector<16x128xf32>
    tpu.vector_store %arg4[%c0_5, %c0_6], %5 {strides = array<i32>} : memref<16x128xf32, #tpu.memory_space<vmem>>, vector<16x128xf32>,
    return
  }
  func.func @transform_0(%arg0: i32) -> (i32, i32) {
    %c0_i32 = arith.constant 0 : i32
    %c0_i32_0 = arith.constant 0 : i32
    return %arg0, %c0_i32 : i32, i32
  }
  func.func @transform_1(%arg0: i32) -> (i32, i32) {
    %c0_i32 = arith.constant 0 : i32
    %c0_i32_0 = arith.constant 0 : i32
    %c0_i32_1 = arith.constant 0 : i32
    return %c0_i32, %c0_i32_0 : i32, i32
  }
  func.func @transform_2(%arg0: i32) -> (i32, i32) {
    %c0_i32 = arith.constant 0 : i32
    %c0_i32_0 = arith.constant 0 : i32
    %c0_i32_1 = arith.constant 0 : i32
    return %c0_i32, %c0_i32_0 : i32, i32
  }
  func.func @transform_3(%arg0: i32) -> (i32, i32) {
    %c0_i32 = arith.constant 0 : i32
    %c0_i32_0 = arith.constant 0 : i32
    return %arg0, %c0_i32 : i32, i32
  }
}

</mosaic_0001>

<bundles_post_ra>
// kernel: patch_embed.2
= control target key start
LH: loop header
LB: loop body
LE: loop exit
PB: predicated region body
PF: predicated region fallthrough
CT: control target
= control target key end

     0   :  { %s702_s0 = inlined_call_operand.vmem [shape: bf16[128,128], index: 0, kind: input, shape index: {}]   ;;  %s703_s1 = inlined_call_operand.vmem [shape: f32[1,128], index: 1, kind: input, shape index: {}]   ;;  %s704_s2 = inlined_call_operand.vmem [shape: bf16[32,64], index: 2, kind: input, shape index: {}]   ;;  %s705_s3 = inlined_call_operand.<no memory space> [shape: bf16[], index: 3, kind: input, shape index: {}]   ;;  %s706_s4 = inlined_call_operand.hbm [shape: f32[32,128], index: 4, kind: output, shape index: {}]  }
   0x1   :  { %v9_v0 = vstv %s705_s3 }
   0x2   :  { %v587_v1 = vunpack.i.l.bf16 %v9_v0 }
   0x3   :  { %14 = vsyncpa [#allocation8], 0 }
   0x4   :  { %16 = vsyncpa [#allocation8 + $0x1], 0  ;;  %s589_s17 = smov 0   ;;  %s591_s18 = smov 0  }
   0x5   :  { %s593_s19 = smov 0   ;;  %s595_s20 = smov 0  }
   0x6 LB: > { %s610_s3 = sadd.s32 4294967295, %s555_s20   ;;  %s392_s21 = sadd.s32 4294967294, %s555_s20   ;;  %s555_s20 = sphi %s595_s20, %s712_s20   ;;  %s551_s19 = sphi %s593_s19, %s711_s19   ;;  %s547_s18 = sphi %s591_s18, %s710_s18   ;;  %s543_s17 = sphi %s589_s17, %s709_s17  }
   0x7   : > { %s614_s22 = sadd.s32 1, %s555_s20   ;;  %s97_s23 = sadd.s32 1, %s551_s19 }
   0x8   : > { %s94_s24 = ssub.s32 %s555_s20, %s614_s22  ;;  %p107_p0 = scmp.ne.s32.totalorder %s551_s19, %s547_s18 }
   0x9   : > { %p95_p1 = scmp.eq.s32.totalorder %s94_s24, 0  ;;  %p108_p2 = scmp.eq.s32.totalorder %s610_s3, 1 }
   0xa   : > { %p113_p3 = scmp.ne.s32.totalorder %s547_s18, %s543_s17  ;;  %p114_p4 = scmp.eq.s32.totalorder %s392_s21, 1 }
   0xb   : > { %s625_s25 = scalar_select %p95_p1, %s551_s19, %s97_s23  }
   0xc   : > { %p627_p5 = por %p108_p2, %p107_p0  ;;  %p631_p6 = por %p114_p4, %p113_p3 }
   0xd   : > { %p395_p7 = scmp.ge.s32.totalorder %s555_s20, 1  ;;  %p147_p8 = scmp.lt.s32.totalorder %s555_s20, 3 }
   0xf   : > { %p148_p9 = pnand %p395_p7, %p147_p8 }
  0x11   : > { %151 = sbr.rel (%p148_p9) target bundleno = 194 (0xc2), region = 32 }
  0x16   : > { %v449_v2 = vld [vmem:[%s702_s0 + $0x38] sm:$0xff]  ;;  %s397_s30 = sshll.u32 %s610_s3, 1  ;;  %v190_v3 = vlaneseq  ;;  %v448_v4 = vld [vmem:[%s702_s0 + $0x30] sm:$0xff]  ;;  %v447_v6 = vld [vmem:[%s702_s0 + $0x28] sm:$0xff]  ;;  %s168_s5 = sand.u32 1, %s547_s18  }
  0x17   : > { %p172_p10 = scmp.lt.s32.totalorder %s397_s30, 3  ;;  %298 = vmatpush.bf16.msra.mxu0 %v449_v2  ;;  %v446_v10 = vld [vmem:[%s702_s0 + $0x20] sm:$0xff]  ;;  %v445_v15 = vld [vmem:[%s702_s0 + $0x18] sm:$0xff]  ;;  %v444_v16 = vld [vmem:[%s702_s0 + $0x10] sm:$0xff]  ;;  %s396_s6 = sshll.u32 %s168_s5, 4 }
  0x18   : > { %v191_v5 = vand.u32 127, %v190_v3  ;;  %v443_v17 = vld [vmem:[%s702_s0 + $0x8] sm:$0xff]  ;;  %v442_v18 = vld [vmem:[%s702_s0] sm:$0xff]  ;;  %s450_s9 = sshll.u32 %s610_s3, 4  ;;  %s170_s13 = scalar_lea.vmem [#allocation7], %s396_s6 }
  0x19   : > { %s714_s30 = smov (!%p172_p10, %s397_s30), 3  ;;  %v492_v20 = vld [vmem:[%s703_s1] ss:$0 sm:$0xff]  ;;  %s327_s14 = sshll.u32 %s170_s13, 4  ;;  %s328_s14 = int_to_ptr.vmem [resolvable:$true] %s327_s14 }
  0x1a   : > { %s398_s7 = sshll.u32 %s714_s30, 2  ;;  %vm193_vm0 = vcmp.lt.s32.totalorder %v191_v5, 64  ;;  %s315_s16 = scalar_lea.sflag [#allocation8], %s168_s5 }
  0x1b   : > { %299 = vmatpush.bf16.msra.mxu0 %v448_v4  ;;  %s175_s12 = scalar_lea.vmem %s704_s2, %s398_s7  ;;  %s513_s28 = scalar_lea.hbm %s706_s4, 32 }
  0x1c   : > { %v187_v7 = vld [vmem:[%s175_s12] sm:$0xff]   ;;  %s326_s12 = scalar_lea.hbm %s706_s4, %s450_s9 }
  0x1d   : > { %v188_v8 = vunpack.c.l.bf16 %v187_v7  ;;  %v210_v9 = vunpack.c.h.bf16 %v187_v7  ;;  %s329_s15 = sshll.u32 %s326_s12, 4  ;;  %s330_s15 = int_to_ptr.hbm [resolvable:$true] %s329_s15 }
  0x1e   : > { %s507_s21 = sshra.s32 %s330_s15, 4  ;;  %s508_s21 = int_to_ptr.hbm [resolvable:$true] %s507_s21 }
  0x1f   : > { %300 = vmatpush.bf16.msra.mxu0 %v447_v6  ;;  %v194_v11 = vsel %vm193_vm0, %v188_v8, %v587_v1  ;;  %v216_v12 = vsel %vm193_vm0, %v210_v9, %v587_v1  ;;  %s509_s3 = scalar_lea.hbm %s508_s21, 16  ;;  %p514_p0 = scmp.lt.s32.totalorder %s508_s21, %s706_s4 }
  0x20   : > { %v195_v13 = vpack.c.bf16 0.0, %v194_v11  ;;  %v218_v14 = vpack.c.bf16 0.0, %v216_v12  ;;  %p510_p11 = scmp.ne.s32.totalorder %s508_s21, %s509_s3  ;;  %p515_p1 = scmp.lt.s32.totalorder %s513_s28, %s509_s3 }
  0x22   : > { %198 = vst [vmem:[#allocation9] sm:$0xf] %v195_v13  ;;  %p511_p12 = pnand %p510_p11, %p627_p5  ;;  %p516_p2 = por %p515_p1, %p514_p0 }
  0x23   : > { %301 = vmatpush.bf16.msra.mxu0 %v446_v10  ;;  %221 = vst [vmem:[#allocation9 + $0x4] sm:$0xf] %v218_v14 }
  0x24   : > { %p512_p13 = pneg %p511_p12 }
  0x26   : > { %p517_p3 = pnand %p516_p2, %p512_p13 }
  0x27   : > { %302 = vmatpush.bf16.msra.mxu0 %v445_v15 }
  0x2a   : > { %v441_v19 = vld [vmem:[#allocation9] sm:$0xff] }
  0x2b   : > { %303 = vmatpush.bf16.msra.mxu0 %v444_v16 }
  0x2f   : > { %304 = vmatpush.bf16.msra.mxu0 %v443_v17 }
  0x33   : > { %305 = vmatpush.bf16.msra.mxu0 %v442_v18 }
  0x36   : > { %306 = vmatmul.bf16.vlgmr.msra.gmra.mxu0 %v441_v19 }
  0xb3   : > { %v307_v21 = vpop.f32.mrf.mxu0 }
  0xb4   : > { %v308_v22 = vadd.f32 %v492_v20, %v307_v21 }
  0xb6   : > { %312 = vst [vmem:[%s170_s13] sm:$0xff] %v308_v22 }
  0xbb   : > { %v309_v23 = vpop.f32.mrf.mxu0 }
  0xbc   : > { %v310_v24 = vadd.f32 %v492_v20, %v309_v23 }
  0xbe   : > { %313 = vst [vmem:[%s170_s13 + $0x8] sm:$0xff] %v310_v24 }
  0xbf   : > { %520 = shalt.err (!%p517_p3)
}
  0xc0   : > { %s557_s5 = smov 128   ;;  %s558_s6 = smov 8  }
  0xc1   : > { %451 = dma.vmem_to_hbm [thread:$0]  (%p627_p5), %s328_s14, 256, %s330_s15, %s315_s16, %s557_s5, %s557_s5, %s558_s6  }
  0xc2 PF: > { %p457_p4 = scmp.ge.s32.totalorder %s555_s20, 2  ;;  %s344_s7 = sand.u32 1, %s543_s17  }
  0xc3   : > { %s345_s8 = scalar_lea.sflag [#allocation8], %s344_s7 }
  0xc4   : > { %p454_p7 = pnand %p457_p4, %p631_p6 }
  0xc6   : > { %p455_p8 = pneg %p454_p7 }
  0xc8   : > { %538 = dma.done.wait (%p455_p8), %s345_s8, 256  }
  0xc9   : > { %540 = vsyncadd (%p455_p8), %s345_s8, 4294967040  ;;  %p19_p9 = scmp.ge.s32.totalorder %s614_s22, 4   ;;  %s709_s17 = smov %s547_s18 }
  0xca   : > { %s710_s18 = smov %s551_s19  ;;  %s711_s19 = smov %s625_s25 }
  0xcb   : > { %s712_s20 = smov %s614_s22  ;;  %21 = sbr.rel (!%p19_p9) target bundleno = 6 (0x6), region = 69 }
  0xd0   :  { %351 = vsyncpa [#allocation8], 1 }
  0xd1   :  { %353 = vsyncpa [#allocation8 + $0x1], 1 }

</bundles_post_ra>
